<compile_context>
chip_gen: v5e
topology: v5e:2x2
jax: 0.10.0
libtpu: 0.0.40
codegen_flags: <defaults>
</compile_context>

<pallas_src>
import functools

import numpy as np
import jax
import jax.numpy as jnp
from jax.experimental import pallas as pl
from jax.experimental.pallas import tpu as pltpu


_FALLBACK_VMEM_BYTES = 64 * 1024 * 1024  # v7x physical (the smallest generation)


def _physical_vmem_bytes() -> int:
    """Per-core VMEM capacity; conservative 64 MiB fallback if unqueryable."""
    try:
        info = pltpu.get_tpu_info()
        cap = int(getattr(info, "vmem_capacity_bytes"))
        if cap > 0:
            return cap
    except Exception:
        pass
    return _FALLBACK_VMEM_BYTES


def _min_row_tile(itemsize: int) -> int:
    """Sublane-packing-aware minimum row tile: 8 f32, 16 bf16, 32 int8/fp8."""
    return max(8, 32 // max(1, int(itemsize)))


def _pick_row_tile(b_local, total_dim, itemsize, budget_bytes):
    """Largest sublane-aligned divisor of b_local whose double-buffered
    working set (~4 * row_tile * total_dim * itemsize) fits the VMEM budget.
    Returns None when no legal tiled decomposition exists (caller falls back
    to a whole-array kernel)."""
    min_rows = _min_row_tile(itemsize)
    cands = [t for t in range(min_rows, b_local + 1, min_rows) if b_local % t == 0]
    if not cands:
        return None

    def working_set(t):
        # double-buffered inputs (widths sum to total_dim) + double-buffered output
        return 4 * t * total_dim * itemsize

    fitting = [t for t in cands if working_set(t) <= budget_bytes]
    row_tile = max(fitting) if fitting else min(cands)

    # Megacore: prefer >= 2 grid steps so "parallel" can shard rows across the
    # two TensorCores on v7x (harmless elsewhere).
    if b_local // row_tile < 2:
        smaller = [t for t in cands if t < row_tile]
        if smaller:
            row_tile = max(smaller)
    return row_tile


# ----------------------------------------------------------------------------
# Kernel bodies.
# ----------------------------------------------------------------------------
def _concat_copy_kernel(*refs, col_starts, col_sizes):
    """out[:, col_starts[r]:col_starts[r]+col_sizes[r]] = in_r (tiled path)."""
    out_ref = refs[-1]
    for in_ref, start, size in zip(refs[:-1], col_starts, col_sizes):
        out_ref[:, start:start + size] = in_ref[...]


def _concat_copy_whole_kernel(*refs, col_starts, col_sizes, row_start, rows):
    """Whole-array fallback: static row slice + column concat in one shot."""
    out_ref = refs[-1]
    for in_ref, start, size in zip(refs[:-1], col_starts, col_sizes):
        out_ref[:, start:start + size] = in_ref[row_start:row_start + rows, :]


# ----------------------------------------------------------------------------
# alltoall_pooled (single-device emulation): one fused Pallas copy per dst.
# ----------------------------------------------------------------------------
def alltoall_pooled(local_embs_per_rank, dim_sum_per_rank, batch_size_per_rank,
                    dst_rank):
    world_size = len(local_embs_per_rank)
    if len(set(int(b) for b in batch_size_per_rank)) != 1:
        # TODO(synk): variable batch sizes need per-rank row offsets.
        raise NotImplementedError("variable batch_size_per_rank not implemented")

    b_local = int(batch_size_per_rank[dst_rank])
    b_global = int(local_embs_per_rank[0].shape[0])
    col_sizes = [int(d) for d in dim_sum_per_rank]
    total_dim = sum(col_sizes)
    col_starts = [0]
    for d in col_sizes[:-1]:
        col_starts.append(col_starts[-1] + d)
    dtype = local_embs_per_rank[0].dtype
    itemsize = int(jnp.dtype(dtype).itemsize)

    phys_vmem = _physical_vmem_bytes()
    # ~75% of physical as the working-set budget: 48 MiB on v7x, 96 MiB on
    # v5e/v6e -- big tiles (>=512-row class) are what buy HBM-roofline BW.
    budget = (phys_vmem * 3) // 4

    row_tile = _pick_row_tile(b_local, total_dim, itemsize, budget)

    if row_tile is None:
        # Whole-array fallback (e.g. b_local < 8, or not a multiple of the
        # packed sublane height): full-array blocks always satisfy the
        # (8,128) BlockSpec rule; row slicing happens inside the body with
        # static offsets.
        kernel = functools.partial(
            _concat_copy_whole_kernel,
            col_starts=tuple(col_starts),
            col_sizes=tuple(col_sizes),
            row_start=dst_rank * b_local,
            rows=b_local,
        )
        needed = 2 * (b_global + b_local) * total_dim * itemsize
        vmem_limit = int(min(phys_vmem, max(needed, 32 * 1024 * 1024)))
        return pl.pallas_call(
            kernel,
            out_shape=jax.ShapeDtypeStruct((b_local, total_dim), dtype),
            compiler_params=pltpu.CompilerParams(vmem_limit_bytes=vmem_limit),
        )(*local_embs_per_rank)

    # Tiled path: uniform batch => dst_rank * b_local is a multiple of
    # row_tile (row_tile divides b_local), so the row offset is a block index.
    n_row_tiles = b_local // row_tile
    row_block_base = dst_rank * n_row_tiles

    def in_index_map(i):
        return (row_block_base + i, 0)

    in_specs = [
        pl.BlockSpec((row_tile, col_sizes[r]), in_index_map)
        for r in range(world_size)
    ]
    out_spec = pl.BlockSpec((row_tile, total_dim), lambda i: (i, 0))

    # VMEM limit derived from the same working-set estimate as the tile picker
    # (2x headroom), capped at the generation's physical capacity.
    needed = 4 * row_tile * total_dim * itemsize
    vmem_limit = int(min(phys_vmem, max(2 * needed, 32 * 1024 * 1024)))

    kernel = functools.partial(
        _concat_copy_kernel,
        col_starts=tuple(col_starts),
        col_sizes=tuple(col_sizes),
    )

    return pl.pallas_call(
        kernel,
        out_shape=jax.ShapeDtypeStruct((b_local, total_dim), dtype),
        grid=(n_row_tiles,),
        in_specs=in_specs,
        out_specs=out_spec,
        compiler_params=pltpu.CompilerParams(
            dimension_semantics=("parallel",),  # row tiles are independent
            vmem_limit_bytes=vmem_limit,
        ),
    )(*local_embs_per_rank)


# ----------------------------------------------------------------------------
# Thin module / awaitable mirrors of the torchrec API.
# ----------------------------------------------------------------------------
class PooledEmbeddingsAwaitable:
    """Mirrors torchrec's awaitable; applies registered callbacks on wait()."""

    def __init__(self, tensor, callbacks=None):
        self._tensor = tensor
        self._callbacks = list(callbacks) if callbacks is not None else []

    @property
    def callbacks(self):
        return self._callbacks

    def wait(self):
        ret = self._tensor
        for cb in self._callbacks:
            ret = cb(ret)
        return ret


class PooledEmbeddingsAllToAll:
    """Single-device simulation of torchrec PooledEmbeddingsAllToAll forward."""

    def __init__(self, world_size, rank, dim_sum_per_rank, callbacks=None):
        self._world_size = world_size
        self._rank = rank
        self._dim_sum_per_rank = [int(d) for d in dim_sum_per_rank]
        self._callbacks = list(callbacks) if callbacks is not None else []
        # Buffers registered in the torch module's __init__ (host-side here).
        self._dim_sum_per_rank_tensor = np.asarray(self._dim_sum_per_rank,
                                                   dtype=np.int32)
        self._cumsum_dim_sum_per_rank_tensor = np.cumsum(
            self._dim_sum_per_rank).astype(np.int32)

    def forward(self, local_embs_per_rank, batch_size_per_rank=None):
        # `local_embs_per_rank` stands in for the ProcessGroup: on real
        # hardware only local_embs_per_rank[self._rank] is local and the rest
        # arrive over ICI (see TODO at top of file).
        b_global = int(local_embs_per_rank[self._rank].shape[0])
        if not batch_size_per_rank:
            assert b_global % self._world_size == 0, (
                f"num of ranks {self._world_size} doesn't divide global batch "
                f"size {b_global}")
            b_local = b_global // self._world_size
            batch_size_per_rank = [b_local] * self._world_size
        out = alltoall_pooled(local_embs_per_rank, self._dim_sum_per_rank,
                              batch_size_per_rank, self._rank)
        return PooledEmbeddingsAwaitable(out, self._callbacks)

    __call__ = forward

    @property
    def callbacks(self):
        return self._callbacks


# ----------------------------------------------------------------------------
# Demo / correctness check.
# ----------------------------------------------------------------------------
def _run_case(key, world_size, dim_sum_per_rank, b_local, dtype):
    b_global = b_local * world_size
    local_embs_per_rank = []
    for _ in range(world_size):
        key, k = jax.random.split(key)
        local_embs_per_rank.append(
            jax.random.normal(k, (b_global, dim_sum_per_rank[len(local_embs_per_rank)]),
                              dtype=jnp.float32).astype(dtype))

    ok = True
    for dst in range(world_size):
        a2a = PooledEmbeddingsAllToAll(world_size, dst, dim_sum_per_rank)
        out = jax.block_until_ready(a2a(local_embs_per_rank).wait())

        ref = jnp.concatenate(
            [local_embs_per_rank[r][dst * b_local:(dst + 1) * b_local, :]
             for r in range(world_size)], axis=1)

        ok &= out.shape == (b_local, sum(dim_sum_per_rank))
        ok &= out.dtype == jnp.dtype(dtype)
        ok &= bool(jnp.array_equal(out, ref))  # pure data movement -> exact
    return key, ok


if __name__ == "__main__":
    key = jax.random.PRNGKey(0)
    ok = True

    # Tiled path, f32, 2 grid steps per dst (8-row tiles), 128-aligned columns.
    key, good = _run_case(key, world_size=2, dim_sum_per_rank=[256, 128],
                          b_local=16, dtype=jnp.float32)
    ok &= good

    # Tiled path, bf16 (dtype-aware 16-row minimum tile), 3 ranks.
    key, good = _run_case(key, world_size=3, dim_sum_per_rank=[128, 128, 256],
                          b_local=32, dtype=jnp.bfloat16)
    ok &= good

    # Whole-array fallback path: b_local=4 < 8 sublanes (previously un-lowerable).
    key, good = _run_case(key, world_size=2, dim_sum_per_rank=[256, 128],
                          b_local=4, dtype=jnp.float32)
    ok &= good

    assert ok
    print("KERNEL_OK")
</pallas_src>

<mosaic_0001>
module attributes {stable_mosaic.version = 11 : i64} {
  func.func @_concat_copy_kernel(%arg0: i32, %arg1: memref<8x256xf32, #tpu.memory_space<vmem>>, %arg2: memref<8x128xf32, #tpu.memory_space<vmem>>, %arg3: memref<8x384xf32, #tpu.memory_space<vmem>>) attributes {dimension_semantics = [#tpu.dimension_semantics<parallel>], iteration_bounds = array<i64: 2>, scalar_prefetch = 0 : i64, scratch_operands = 0 : i64, tpu.core_type = #tpu.core_type<tc>, window_params = [{transform_indices = @transform_0, window_bounds = array<i64: 8, 256>}, {transform_indices = @transform_1, window_bounds = array<i64: 8, 128>}, {transform_indices = @transform_2, window_bounds = array<i64: 8, 384>}]} {
    %c0 = arith.constant 0 : index
    %c0_0 = arith.constant 0 : index
    %0 = vector.load %arg1[%c0, %c0_0] : memref<8x256xf32, #tpu.memory_space<vmem>>, vector<8x256xf32>
    %c0_1 = arith.constant 0 : index
    %c0_2 = arith.constant 0 : index
    %1 = vector.load %arg3[%c0_1, %c0_2] : memref<8x384xf32, #tpu.memory_space<vmem>>, vector<8x256xf32>
    tpu.vector_store %arg3[%c0_1, %c0_2], %0 {strides = array<i32>} : memref<8x384xf32, #tpu.memory_space<vmem>>, vector<8x256xf32>,
    %c0_3 = arith.constant 0 : index
    %c0_4 = arith.constant 0 : index
    %2 = vector.load %arg2[%c0_3, %c0_4] : memref<8x128xf32, #tpu.memory_space<vmem>>, vector<8x128xf32>
    %c0_5 = arith.constant 0 : index
    %c256 = arith.constant 256 : index
    %3 = vector.load %arg3[%c0_5, %c256] : memref<8x384xf32, #tpu.memory_space<vmem>>, vector<8x128xf32>
    tpu.vector_store %arg3[%c0_5, %c256], %2 {strides = array<i32>} : memref<8x384xf32, #tpu.memory_space<vmem>>, vector<8x128xf32>,
    return
  }
  func.func @transform_0(%arg0: i32) -> (i32, i32) {
    %c0_i32 = arith.constant 0 : i32
    %0 = arith.addi %c0_i32, %arg0 : i32
    %c0_i32_0 = arith.constant 0 : i32
    %c0_i32_1 = arith.constant 0 : i32
    return %0, %c0_i32_0 : i32, i32
  }
  func.func @transform_1(%arg0: i32) -> (i32, i32) {
    %c0_i32 = arith.constant 0 : i32
    %0 = arith.addi %c0_i32, %arg0 : i32
    %c0_i32_0 = arith.constant 0 : i32
    %c0_i32_1 = arith.constant 0 : i32
    return %0, %c0_i32_0 : i32, i32
  }
  func.func @transform_2(%arg0: i32) -> (i32, i32) {
    %c0_i32 = arith.constant 0 : i32
    %c0_i32_0 = arith.constant 0 : i32
    return %arg0, %c0_i32 : i32, i32
  }
}

</mosaic_0001>

<bundles_post_ra>
// kernel: tpu_custom_call.1
= control target key start
LH: loop header
LB: loop body
LE: loop exit
PB: predicated region body
PF: predicated region fallthrough
CT: control target
= control target key end

     0   :  { %7 = vsyncpa [#allocation3], 0  ;;  %s696_s0 = inlined_call_operand.hbm [shape: f32[32,256], index: 0, kind: input, shape index: {}]   ;;  %s697_s1 = inlined_call_operand.hbm [shape: f32[32,128], index: 1, kind: input, shape index: {}]   ;;  %s698_s2 = inlined_call_operand.hbm [shape: f32[16,384], index: 2, kind: output, shape index: {}]  }
   0x1   :  { %9 = vsyncpa [#allocation3 + $0x1], 0 }
   0x2   :  { %10 = vsyncpa [#allocation6], 0 }
   0x3   :  { %12 = vsyncpa [#allocation6 + $0x1], 0 }
   0x4   :  { %13 = vsyncpa [#allocation4], 0 }
   0x5   :  { %15 = vsyncpa [#allocation4 + $0x1], 0  ;;  %s532_s9 = smov 0   ;;  %s534_s10 = smov 0  }
   0x6   :  { %s536_s11 = smov 0   ;;  %s538_s12 = smov 0  }
   0x7 LB: > { %s553_s13 = sadd.s32 4294967295, %s515_s12   ;;  %s317_s14 = sadd.s32 4294967294, %s515_s12   ;;  %s515_s12 = sphi %s538_s12, %s709_s12   ;;  %s511_s11 = sphi %s536_s11, %s708_s11   ;;  %s507_s10 = sphi %s534_s10, %s707_s10   ;;  %s503_s9 = sphi %s532_s9, %s706_s9  }
   0x8   : > { %s557_s15 = sadd.s32 1, %s515_s12   ;;  %s28_s16 = sadd.s32 1, %s511_s11 }
   0x9   : > { %s25_s17 = ssub.s32 %s515_s12, %s557_s15  ;;  %p35_p0 = scmp.ne.s32.totalorder %s511_s11, %s507_s10 }
   0xa   : > { %p26_p1 = scmp.eq.s32.totalorder %s25_s17, 0  ;;  %p36_p2 = scmp.eq.s32.totalorder %s515_s12, 0 }
   0xb   : > { %p41_p3 = scmp.ne.s32.totalorder %s507_s10, %s503_s9  ;;  %p42_p4 = scmp.eq.s32.totalorder %s553_s13, 0 }
   0xc   : > { %s569_s18 = scalar_select %p26_p1, %s511_s11, %s28_s16  }
   0xd   : > { %p571_p5 = por %p36_p2, %p35_p0  ;;  %p575_p6 = por %p42_p4, %p41_p3 }
   0xe   : > { %p91_p7 = scmp.eq.s32.totalorder %s553_s13, 1  ;;  %p97_p8 = scmp.eq.s32.totalorder %s317_s14, 1 }
   0xf   : > { %p351_p10 = scmp.lt.s32.totalorder %s515_s12, 2  ;;  %s591_s23 = sand.u32 1, %s511_s11  }
  0x10   : > { %p582_p11 = por %p91_p7, %p35_p0  ;;  %p586_p12 = por %p97_p8, %p41_p3 }
  0x11   : > { %s331_s24 = sshll.u32 %s515_s12, 4  ;;  %s320_s25 = sshll.u32 %s591_s23, 4 }
  0x12   : > { %s126_s28 = scalar_lea.hbm %s696_s0, %s331_s24  ;;  %s121_s30 = scalar_lea.vmem [#allocation2], %s320_s25 }
  0x13   : > { %s128_s29 = sshll.u32 %s126_s28, 4  ;;  %s130_s3 = sshll.u32 %s121_s30, 4  ;;  %s129_s29 = int_to_ptr.hbm [resolvable:$true] %s128_s29  ;;  %s131_s3 = int_to_ptr.vmem [resolvable:$true] %s130_s3 }
  0x14   : > { %p600_p13 = pnand %p351_p10, %p571_p5  ;;  %p325_p0 = scmp.ge.s32.totalorder %s515_s12, 1 }
  0x15   : > { %p154_p1 = scmp.lt.s32.totalorder %s515_s12, 3  ;;  %s323_s5 = sshll.u32 %s591_s23, 3 }
  0x16   : > { %s118_s6 = scalar_lea.sflag [#allocation3], %s591_s23  ;;  %s385_s7 = sshra.s32 %s129_s29, 4  ;;  %s386_s7 = int_to_ptr.hbm [resolvable:$true] %s385_s7 }
  0x17   : > { %s387_s8 = scalar_lea.hbm %s386_s7, 16  ;;  %p389_p3 = pneg %p600_p13 }
  0x18   : > { %p388_p2 = scmp.ne.s32.totalorder %s386_s7, %s387_s8  ;;  %s392_s17 = scalar_lea.hbm %s696_s0, 64 }
  0x19   : > { %p393_p5 = scmp.lt.s32.totalorder %s386_s7, %s696_s0  ;;  %p394_p8 = scmp.lt.s32.totalorder %s392_s17, %s387_s8 }
  0x1a   : > { %p390_p4 = pnand %p389_p3, %p388_p2 }
  0x1b   : > { %p395_p10 = por %p394_p8, %p393_p5 }
  0x1c   : > { %p391_p7 = pneg %p390_p4 }
  0x1e   : > { %p396_p9 = pnand %p395_p10, %p391_p7 }
  0x20   : > { %399 = shalt.err (!%p396_p9)
}
  0x21   : > { %343 = dma.hbm_to_vmem [thread:$0]  (!%p600_p13), %s129_s29, 256, %s131_s3, %s118_s6  }
  0x22   : > { %p625_p2 = pnand %p325_p0, %p154_p1  ;;  %s324_s26 = sshll.u32 %s515_s12, 3 }
  0x23   : > { %s141_s27 = scalar_lea.vmem [#allocation5], %s323_s5  ;;  %s145_s8 = scalar_lea.hbm %s697_s1, %s324_s26 }
  0x24   : > { %s149_s28 = sshll.u32 %s141_s27, 4  ;;  %s147_s14 = sshll.u32 %s145_s8, 4  ;;  %s150_s28 = int_to_ptr.vmem [resolvable:$true] %s149_s28  ;;  %s148_s14 = int_to_ptr.hbm [resolvable:$true] %s147_s14 }
  0x25   : > { %s138_s16 = scalar_lea.sflag [#allocation6], %s591_s23  ;;  %s415_s17 = sshra.s32 %s148_s14, 4  ;;  %s416_s17 = int_to_ptr.hbm [resolvable:$true] %s415_s17 }
  0x26   : > { %s417_s29 = scalar_lea.hbm %s416_s17, 8  ;;  %s422_s5 = scalar_lea.hbm %s697_s1, 32 }
  0x27   : > { %p418_p9 = scmp.ne.s32.totalorder %s416_s17, %s417_s29  ;;  %p423_p4 = scmp.lt.s32.totalorder %s416_s17, %s697_s1 }
  0x28   : > { %p424_p7 = scmp.lt.s32.totalorder %s422_s5, %s417_s29 }
  0x29   : > { %p420_p0 = pnand %p418_p9, %p389_p3 }
  0x2a   : > { %p425_p5 = por %p424_p7, %p423_p4 }
  0x2b   : > { %p421_p1 = pneg %p420_p0 }
  0x2d   : > { %p426_p8 = pnand %p425_p5, %p421_p1 }
  0x2f   : > { %429 = shalt.err (!%p426_p8)
}
  0x30   : > { %346 = dma.hbm_to_vmem [thread:$0]  (!%p600_p13), %s148_s14, 128, %s150_s28, %s138_s16  }
  0x31   : > { %158 = sbr.rel (%p625_p2) target bundleno = 75 (0x4b), region = 28  ;;  %s648_s23 = sand.u32 (!%p625_p2), 1, %s507_s10  }
  0x32   : > { %s326_s26 = sshll.u32 (!%p625_p2), %s648_s23, 4  ;;  %s161_s27 = scalar_lea.sflag (!%p625_p2), [#allocation3], %s648_s23 }
  0x33   : > { %s164_s30 = scalar_lea.vmem (!%p625_p2), [#allocation2], %s326_s26 }
  0x36   : > { %490 = dma.done.wait (%p575_p6), %s161_s27, 256  }
  0x37   : > { %492 = vsyncadd (%p575_p6), %s161_s27, 4294967040  ;;  %s327_s4 = sshll.u32 %s648_s23, 3  ;;  %s171_s25 = scalar_lea.sflag [#allocation6], %s648_s23 }
  0x38   : > { %s174_s28 = scalar_lea.vmem [#allocation5], %s327_s4 }
  0x39   : > { %494 = dma.done.wait (%p575_p6), %s171_s25, 128  }
  0x3a   : > { %496 = vsyncadd (%p575_p6), %s171_s25, 4294967168  ;;  %s332_s7 = smul.u32 24, %s648_s23  ;;  %v201_v0 = vld [vmem:[%s164_s30] sm:$0xff]  ;;  %v202_v1 = vld [vmem:[%s164_s30 + $0x8] sm:$0xff]  ;;  %s208_s20 = scalar_lea.sflag [#allocation4], %s648_s23 }
  0x3b   : > { %s333_s8 = smul.u32 24, %s553_s13  ;;  %v205_v2 = vld [vmem:[%s174_s28] sm:$0xff]  ;;  %s465_s26 = scalar_lea.hbm %s698_s2, 48 }
  0x3c   : > { %s200_s29 = scalar_lea.vmem [#allocation7], %s332_s7 }
  0x3d   : > { %s219_s17 = scalar_lea.hbm %s698_s2, %s333_s8  ;;  %s221_s3 = sshll.u32 %s200_s29, 4  ;;  %203 = vst [vmem:[%s200_s29] sm:$0xff] %v201_v0  ;;  %s222_s3 = int_to_ptr.vmem [resolvable:$true] %s221_s3 }
  0x3e   : > { %s223_s6 = sshll.u32 %s219_s17, 4  ;;  %204 = vst [vmem:[%s200_s29 + $0x8] sm:$0xff] %v202_v1  ;;  %s224_s6 = int_to_ptr.hbm [resolvable:$true] %s223_s6 }
  0x3f   : > { %206 = vst [vmem:[%s200_s29 + $0x10] sm:$0xff] %v205_v2  ;;  %s459_s5 = sshra.s32 %s224_s6, 4  ;;  %s460_s5 = int_to_ptr.hbm [resolvable:$true] %s459_s5 }
  0x40   : > { %s461_s13 = scalar_lea.hbm %s460_s5, 24  ;;  %p466_p10 = scmp.lt.s32.totalorder %s460_s5, %s698_s2 }
  0x41   : > { %p462_p6 = scmp.ne.s32.totalorder %s460_s5, %s461_s13  ;;  %p467_p2 = scmp.lt.s32.totalorder %s465_s26, %s461_s13 }
  0x43   : > { %p463_p13 = pnand %p462_p6, %p582_p11  ;;  %p468_p9 = por %p467_p2, %p466_p10 }
  0x45   : > { %p464_p3 = pneg %p463_p13 }
  0x47   : > { %p469_p0 = pnand %p468_p9, %p464_p3 }
  0x49   : > { %472 = shalt.err (!%p469_p0)
}
  0x4a   : > { %338 = dma.vmem_to_hbm [thread:$0]  (%p582_p11), %s222_s3, 384, %s224_s6, %s208_s20  }
  0x4b PF: > { %s235_s23 = sand.u32 1, %s503_s9   ;;  %p705_p1 = scmp.ge.s32.totalorder %s515_s12, 2 }
  0x4c   : > { %s236_s4 = scalar_lea.sflag [#allocation4], %s235_s23 }
  0x4d   : > { %p348_p4 = pnand %p705_p1, %p586_p12 }
  0x4f   : > { %p349_p7 = pneg %p348_p4 }
  0x51   : > { %498 = dma.done.wait (%p349_p7), %s236_s4, 384  }
  0x52   : > { %500 = vsyncadd (%p349_p7), %s236_s4, 4294966912  ;;  %p18_p5 = scmp.ge.s32.totalorder %s557_s15, 4   ;;  %s706_s9 = smov %s507_s10 }
  0x53   : > { %s707_s10 = smov %s511_s11  ;;  %s708_s11 = smov %s569_s18 }
  0x54   : > { %s709_s12 = smov %s557_s15  ;;  %20 = sbr.rel (!%p18_p5) target bundleno = 7 (0x7), region = 86 }
  0x59   :  { %242 = vsyncpa [#allocation3], 1 }
  0x5a   :  { %244 = vsyncpa [#allocation3 + $0x1], 1 }
  0x5b   :  { %245 = vsyncpa [#allocation6], 1 }
  0x5c   :  { %247 = vsyncpa [#allocation6 + $0x1], 1 }
  0x5d   :  { %248 = vsyncpa [#allocation4], 1 }
  0x5e   :  { %250 = vsyncpa [#allocation4 + $0x1], 1 }

</bundles_post_ra>
